<compile_context>
chip_gen: v7x
topology: tpu7x:2x2x1
jax: 0.10.0
libtpu: 0.0.40
codegen_flags: <defaults>
</compile_context>

<pallas_src>
import math

import jax
import jax.numpy as jnp
from jax import lax
from jax.experimental import pallas as pl
from jax.experimental.pallas import tpu as pltpu


def _round_up(x, m):
    return (x + m - 1) // m * m


def _lane(n):   # lane-axis footprint (last dim)
    return max(_round_up(n, 128), 128)


def _sub(n):    # sublane-axis footprint (second-to-last dim)
    return max(_round_up(n, 8), 8)


def _vmem_ceiling_bytes():
    """Physical VMEM per TensorCore with ~20% headroom for Mosaic scratch."""
    cap = None
    try:
        cap = getattr(pltpu.get_tpu_info(), "vmem_capacity_bytes", None)
    except Exception:
        cap = None
    if not cap:
        cap = 64 * 1024 * 1024          # conservative default (v7x per-TC)
    return int(cap * 0.8)               # ~51 MiB on v7x, ~102 MiB on v5e/v6e


def _make_kernel(has_bias, precision):
    def kernel(*refs):
        if has_bias:
            x_ref, w_ref, b_ref, o_ref = refs
        else:
            x_ref, w_ref, o_ref = refs
            b_ref = None
        w = w_ref[...]                       # [K, tn] (pre-transposed, resident)
        x = x_ref[...]                       # [tm, K]
        if x.dtype != w.dtype:
            x = x.astype(w.dtype)            # per-tile VPU cast, hidden under DMA
        acc = lax.dot_general(
            x, w,
            dimension_numbers=(((1,), (0,)), ((), ())),   # [tm,K] @ [K,tn]
            preferred_element_type=jnp.float32,
            precision=precision)
        if b_ref is not None:
            acc = acc + b_ref[...]           # f32 bias row, broadcast over rows
        o_ref[...] = acc.astype(o_ref.dtype)
    return kernel


def prepare_to_latent_params(weight, bias=None, compute_dtype=None):
    """One-time parameter prep (hoist this out of the per-step forward path).

    weight: [dim_out, dim_in] (PyTorch layout) -> W^T [dim_in, dim_out], cast
            to compute_dtype if given.  bias -> f32 row [1, dim_out] (or None).
    """
    wt = jnp.asarray(weight).T
    if compute_dtype is not None:
        wt = wt.astype(compute_dtype)
    b2d = None if bias is None else jnp.asarray(bias, jnp.float32).reshape(1, -1)
    return wt, b2d


def to_latent_forward(x, weight=None, bias=None, *, prepared=None,
                      compute_dtype=None, out_dtype=None,
                      tm_target=1024, tn_override=None):
    """F.linear(x, weight, bias) via Pallas.

    x:        [..., dim_in]
    weight:   [dim_out, dim_in] (PyTorch convention); ignored if `prepared`
              (from prepare_to_latent_params) is given.
    bias:     [dim_out] or None; ignored if `prepared` is given.
    compute_dtype: MXU operand dtype (e.g. jnp.bfloat16); accumulation is
              always f32.  The x cast happens per-tile inside the kernel.
    """
    if prepared is None:
        assert weight is not None, "pass `weight` or `prepared`"
        prepared = prepare_to_latent_params(weight, bias, compute_dtype)
    wt, b2d = prepared

    orig_shape = x.shape
    dim_in = orig_shape[-1]
    K, dim_out = wt.shape
    assert K == dim_in, "weight must be [dim_out, dim_in] (prepared: [dim_in, dim_out])"

    out_dtype = jnp.dtype(out_dtype or x.dtype)
    # Strict f32 parity with torch F.linear on the f32-operand path (kernel is
    # memory-bound, so the multi-pass MXU cost is irrelevant).
    precision = (lax.Precision.HIGHEST
                 if jnp.dtype(wt.dtype) == jnp.float32 else None)

    x2d = x.reshape(-1, dim_in)              # no cast / no pad here (hot path)
    M = x2d.shape[0]

    x_isz = x2d.dtype.itemsize
    w_isz = jnp.dtype(wt.dtype).itemsize
    o_isz = out_dtype.itemsize

    vmem_ceiling = _vmem_ceiling_bytes()

    # ---- N (dim_out) tiling: whole weight resident when it fits the budget,
    #      otherwise 256-lane tiles (multiple of the v6e/v7x 256x256 MXU).
    w_budget = vmem_ceiling // 3
    if tn_override is not None:
        tn = min(int(tn_override), dim_out)
    elif _sub(K) * _lane(dim_out) * w_isz <= w_budget:
        tn = dim_out
    else:
        tn = max(256, (w_budget // (2 * _sub(K) * w_isz)) // 256 * 256)
        tn = min(tn, dim_out)
    n_tiles = pl.cdiv(dim_out, tn)
    w_invariant = (n_tiles == 1)
    w_bufs = 1 if w_invariant else 2

    # ---- M (row) tiling: as big as the budget allows, but >=2 grid steps once
    #      M >= 64 so both v7x TensorCores get work on the "parallel" axis.
    if M < 64:
        tm = _sub(M)
    else:
        tm = min(tm_target, _round_up(pl.cdiv(M, 2), 8))

    def vmem_est(tm_):
        x_t = 2 * _sub(tm_) * _lane(K) * x_isz            # double-buffered x tiles
        o_t = 2 * _sub(tm_) * _lane(tn) * o_isz           # double-buffered out tiles
        w_t = w_bufs * _sub(K) * _lane(tn) * w_isz        # resident weight block(s)
        b_t = w_bufs * 8 * _lane(tn) * 4                  # bias row(s), f32
        scr = _sub(tm_) * (_lane(K) * w_isz               # in-kernel cast temp
                           + _lane(tn) * 4)               # f32 accumulator
        return x_t + o_t + w_t + b_t + scr

    while vmem_est(tm) > vmem_ceiling and tm > 8:
        tm = max(8, _round_up(tm // 2, 8))
    m_tiles = pl.cdiv(M, tm)

    vmem_limit = int(min(max(int(1.5 * vmem_est(tm)), 32 * 1024 * 1024),
                         vmem_ceiling))

    cost = pl.CostEstimate(
        flops=2 * M * K * dim_out,
        transcendentals=0,
        bytes_accessed=(M * K * x_isz + K * dim_out * w_isz
                        + M * dim_out * o_isz
                        + (dim_out * 4 if b2d is not None else 0)))

    cparams = pltpu.CompilerParams(
        dimension_semantics=("parallel", "parallel"),   # independent M / N tiles
        vmem_limit_bytes=vmem_limit)

    has_bias = b2d is not None
    kernel = _make_kernel(has_bias, precision)

    def build_and_run(single_buffer_invariants):
        if single_buffer_invariants:
            # Grid-invariant weight/bias: one VMEM buffer (no prefetch needed).
            w_spec = pl.BlockSpec((K, tn), lambda i, j: (0, j),
                                  pipeline_mode=pl.Buffered(1))
            b_spec = pl.BlockSpec((1, tn), lambda i, j: (0, j),
                                  pipeline_mode=pl.Buffered(1))
        else:
            w_spec = pl.BlockSpec((K, tn), lambda i, j: (0, j))
            b_spec = pl.BlockSpec((1, tn), lambda i, j: (0, j))
        x_spec = pl.BlockSpec((tm, K), lambda i, j: (i, 0))
        o_spec = pl.BlockSpec((tm, tn), lambda i, j: (i, j))
        in_specs = [x_spec, w_spec] + ([b_spec] if has_bias else [])
        operands = (x2d, wt) + ((b2d,) if has_bias else ())
        return pl.pallas_call(
            kernel,
            out_shape=jax.ShapeDtypeStruct((M, dim_out), out_dtype),
            grid_spec=pltpu.PrefetchScalarGridSpec(
                num_scalar_prefetch=0,
                grid=(m_tiles, n_tiles),
                in_specs=in_specs,
                out_specs=o_spec),
            compiler_params=cparams,
            cost_estimate=cost,
        )(*operands)

    try:
        out2d = build_and_run(w_invariant)
    except Exception:
        # pl.Buffered(1) unsupported on this jax version -> default buffering.
        out2d = build_and_run(False)

    return out2d.reshape(*orig_shape[:-1], dim_out)


def init_to_latent_params(key, dim_in, dim_out, w0=1.0, c=6.0,
                          is_first=False, use_bias=True):
    """Deterministic init matching To_Latent.init_ (uniform in [-w_std, w_std])."""
    w_std = (1.0 / dim_in) if is_first else (math.sqrt(c / dim_in) / w0)
    kw, kb = jax.random.split(key)
    weight = jax.random.uniform(
        kw, (dim_out, dim_in), jnp.float32, minval=-w_std, maxval=w_std)
    bias = (jax.random.uniform(
        kb, (dim_out,), jnp.float32, minval=-w_std, maxval=w_std)
        if use_bias else None)
    return weight, bias


if __name__ == "__main__":
    key = jax.random.PRNGKey(0)
    k_x, k_p, k_x2, k_x3, k_p2 = jax.random.split(key, 5)

    # Small shapes consistent with a SIREN To_Latent layer.
    batch, seq, dim_in, dim_out = 2, 8, 32, 64
    x = jax.random.normal(k_x, (batch, seq, dim_in), dtype=jnp.float32)
    weight, bias = init_to_latent_params(
        k_p, dim_in, dim_out, w0=1.0, c=6.0, is_first=False, use_bias=True)
    ref = x @ weight.T + bias

    # f32-operand path (precision=HIGHEST): parity with torch F.linear.
    out = jax.block_until_ready(to_latent_forward(x, weight, bias))
    assert out.shape == (batch, seq, dim_out)
    assert jnp.allclose(out, ref, atol=1e-5, rtol=1e-5), "f32 path mismatch"

    # bf16-operand path (cast per-tile in-kernel, f32 accumulation).
    out_bf16 = jax.block_until_ready(
        to_latent_forward(x, weight, bias, compute_dtype=jnp.bfloat16))
    assert out_bf16.dtype == x.dtype
    assert jnp.allclose(out_bf16, ref, atol=5e-2, rtol=5e-2), "bf16 path mismatch"

    # Hoisted (prepared) params reused on the hot path.
    prepared = prepare_to_latent_params(weight, bias)
    out_prep = jax.block_until_ready(to_latent_forward(x, prepared=prepared))
    assert jnp.allclose(out_prep, ref, atol=1e-5, rtol=1e-5), "prepared mismatch"

    # use_bias=False + M not a multiple of 8 (ragged edge block, no pad pass).
    x_ragged = jax.random.normal(k_x2, (3, 5, dim_in), dtype=jnp.float32)
    w_nb, _ = init_to_latent_params(k_p, dim_in, dim_out, use_bias=False)
    out_nb = jax.block_until_ready(to_latent_forward(x_ragged, w_nb, None))
    assert out_nb.shape == (3, 5, dim_out)
    assert jnp.allclose(out_nb, x_ragged @ w_nb.T, atol=1e-5, rtol=1e-5), \
        "no-bias mismatch"

    # M >= 64: 2-step "parallel" M grid (both v7x TCs) with a ragged last tile.
    x_mid = jax.random.normal(k_x3, (9, 8, dim_in), dtype=jnp.float32)   # M = 72
    out_mid = jax.block_until_ready(to_latent_forward(x_mid, weight, bias))
    assert jnp.allclose(out_mid, x_mid @ weight.T + bias, atol=1e-5, rtol=1e-5), \
        "multi-tile mismatch"

    # Forced N tiling (tn=256 on dim_out=320) exercises the N grid-axis path.
    w_big, b_big = init_to_latent_params(k_p2, dim_in, 320, use_bias=True)
    out_big = jax.block_until_ready(
        to_latent_forward(x, w_big, b_big, tn_override=256))
    assert out_big.shape == (batch, seq, 320)
    assert jnp.allclose(out_big, x @ w_big.T + b_big, atol=1e-5, rtol=1e-5), \
        "N-tiled mismatch"

    print("KERNEL_OK")
</pallas_src>

<mosaic_0001>
module attributes {stable_mosaic.version = 11 : i64} {
  func.func @kernel(%arg0: i32, %arg1: i32, %arg2: memref<16x32xf32, #tpu.memory_space<vmem>>, %arg3: memref<32x64xf32, #tpu.memory_space<vmem>>, %arg4: memref<1x64xf32, #tpu.memory_space<vmem>>, %arg5: memref<16x64xf32, #tpu.memory_space<vmem>>) attributes {dimension_semantics = [#tpu.dimension_semantics<parallel>, #tpu.dimension_semantics<parallel>], iteration_bounds = array<i64: 1, 1>, scalar_prefetch = 0 : i64, scratch_operands = 0 : i64, tpu.core_type = #tpu.core_type<tc>, window_params = [{transform_indices = @transform_0, window_bounds = array<i64: 16, 32>}, {pipeline_mode = #tpu.pipeline_mode<synchronous>, transform_indices = @transform_1, window_bounds = array<i64: 32, 64>}, {pipeline_mode = #tpu.pipeline_mode<synchronous>, transform_indices = @transform_2, window_bounds = array<i64: 1, 64>}, {transform_indices = @transform_3, window_bounds = array<i64: 16, 64>}]} {
    %c0 = arith.constant 0 : index
    %c0_0 = arith.constant 0 : index
    %0 = vector.load %arg3[%c0, %c0_0] : memref<32x64xf32, #tpu.memory_space<vmem>>, vector<32x64xf32>
    %c0_1 = arith.constant 0 : index
    %c0_2 = arith.constant 0 : index
    %1 = vector.load %arg2[%c0_1, %c0_2] : memref<16x32xf32, #tpu.memory_space<vmem>>, vector<16x32xf32>
    %cst = arith.constant dense<0.000000e+00> : vector<16x64xf32>
    %2 = tpu.matmul %1, %0, %cst {dimension_numbers = #tpu.dot_dimension_numbers<[1], [0], [0], [1], [0, 0, 1, 1], [], []>, precision = #tpu.contract_precision<fp32>} : vector<16x32xf32>, vector<32x64xf32>, vector<16x64xf32> -> vector<16x64xf32>
    %c0_3 = arith.constant 0 : index
    %c0_4 = arith.constant 0 : index
    %3 = vector.load %arg4[%c0_3, %c0_4] : memref<1x64xf32, #tpu.memory_space<vmem>>, vector<1x64xf32>
    %4 = vector.broadcast %3 : vector<1x64xf32> to vector<16x64xf32>
    %5 = arith.addf %2, %4 : vector<16x64xf32>
    %c0_5 = arith.constant 0 : index
    %c0_6 = arith.constant 0 : index
    %6 = vector.load %arg5[%c0_5, %c0_6] : memref<16x64xf32, #tpu.memory_space<vmem>>, vector<16x64xf32>
    tpu.vector_store %arg5[%c0_5, %c0_6], %5 {strides = array<i32>} : memref<16x64xf32, #tpu.memory_space<vmem>>, vector<16x64xf32>,
    return
  }
  func.func @transform_0(%arg0: i32, %arg1: i32) -> (i32, i32) {
    %c0_i32 = arith.constant 0 : i32
    %c0_i32_0 = arith.constant 0 : i32
    return %arg0, %c0_i32 : i32, i32
  }
  func.func @transform_1(%arg0: i32, %arg1: i32) -> (i32, i32) {
    %c0_i32 = arith.constant 0 : i32
    %c0_i32_0 = arith.constant 0 : i32
    return %c0_i32, %arg1 : i32, i32
  }
  func.func @transform_2(%arg0: i32, %arg1: i32) -> (i32, i32) {
    %c0_i32 = arith.constant 0 : i32
    %c0_i32_0 = arith.constant 0 : i32
    return %c0_i32, %arg1 : i32, i32
  }
  func.func @transform_3(%arg0: i32, %arg1: i32) -> (i32, i32) {
    %c0_i32 = arith.constant 0 : i32
    return %arg0, %arg1 : i32, i32
  }
}

module attributes {stable_mosaic.version = 11 : i64} {
  func.func @kernel(%arg0: i32, %arg1: i32, %arg2: memref<16x32xf32, #tpu.memory_space<vmem>>, %arg3: memref<32x64xf32, #tpu.memory_space<vmem>>, %arg4: memref<1x64xf32, #tpu.memory_space<vmem>>, %arg5: memref<16x64xf32, #tpu.memory_space<vmem>>) attributes {dimension_semantics = [#tpu.dimension_semantics<parallel>, #tpu.dimension_semantics<parallel>], iteration_bounds = array<i64: 1, 1>, scalar_prefetch = 0 : i64, scratch_operands = 0 : i64, tpu.core_type = #tpu.core_type<tc>, window_params = [{transform_indices = @transform_0, window_bounds = array<i64: 16, 32>}, {transform_indices = @transform_1, window_bounds = array<i64: 32, 64>}, {transform_indices = @transform_2, window_bounds = array<i64: 1, 64>}, {transform_indices = @transform_3, window_bounds = array<i64: 16, 64>}]} {
    %c0 = arith.constant 0 : index
    %c0_0 = arith.constant 0 : index
    %0 = vector.load %arg3[%c0, %c0_0] : memref<32x64xf32, #tpu.memory_space<vmem>>, vector<32x64xf32>
    %c0_1 = arith.constant 0 : index
    %c0_2 = arith.constant 0 : index
    %1 = vector.load %arg2[%c0_1, %c0_2] : memref<16x32xf32, #tpu.memory_space<vmem>>, vector<16x32xf32>
    %cst = arith.constant dense<0.000000e+00> : vector<16x64xf32>
    %2 = tpu.matmul %1, %0, %cst {dimension_numbers = #tpu.dot_dimension_numbers<[1], [0], [0], [1], [0, 0, 1, 1], [], []>, precision = #tpu.contract_precision<fp32>} : vector<16x32xf32>, vector<32x64xf32>, vector<16x64xf32> -> vector<16x64xf32>
    %c0_3 = arith.constant 0 : index
    %c0_4 = arith.constant 0 : index
    %3 = vector.load %arg4[%c0_3, %c0_4] : memref<1x64xf32, #tpu.memory_space<vmem>>, vector<1x64xf32>
    %4 = vector.broadcast %3 : vector<1x64xf32> to vector<16x64xf32>
    %5 = arith.addf %2, %4 : vector<16x64xf32>
    %c0_5 = arith.constant 0 : index
    %c0_6 = arith.constant 0 : index
    %6 = vector.load %arg5[%c0_5, %c0_6] : memref<16x64xf32, #tpu.memory_space<vmem>>, vector<16x64xf32>
    tpu.vector_store %arg5[%c0_5, %c0_6], %5 {strides = array<i32>} : memref<16x64xf32, #tpu.memory_space<vmem>>, vector<16x64xf32>,
    return
  }
  func.func @transform_0(%arg0: i32, %arg1: i32) -> (i32, i32) {
    %c0_i32 = arith.constant 0 : i32
    %c0_i32_0 = arith.constant 0 : i32
    return %arg0, %c0_i32 : i32, i32
  }
  func.func @transform_1(%arg0: i32, %arg1: i32) -> (i32, i32) {
    %c0_i32 = arith.constant 0 : i32
    %c0_i32_0 = arith.constant 0 : i32
    return %c0_i32, %arg1 : i32, i32
  }
  func.func @transform_2(%arg0: i32, %arg1: i32) -> (i32, i32) {
    %c0_i32 = arith.constant 0 : i32
    %c0_i32_0 = arith.constant 0 : i32
    return %c0_i32, %arg1 : i32, i32
  }
  func.func @transform_3(%arg0: i32, %arg1: i32) -> (i32, i32) {
    %c0_i32 = arith.constant 0 : i32
    return %arg0, %arg1 : i32, i32
  }
}

</mosaic_0001>

<bundles_post_ra>
// kernel: tpu_custom_call.1
= control target key start
LH: loop header
LB: loop body
LE: loop exit
PB: predicated region body
PF: predicated region fallthrough
CT: control target
= control target key end

     0   :  { %8 = vsyncpa [#allocation3], 0  ;;  %s937_s0 = inlined_call_operand.hbm [shape: f32[16,32], index: 0, kind: input, shape index: {}]   ;;  %s938_s1 = inlined_call_operand.hbm [shape: f32[32,64], index: 1, kind: input, shape index: {}]   ;;  %s939_s2 = inlined_call_operand.vmem [shape: f32[1,64], index: 2, kind: input, shape index: {}]   ;;  %s940_s3 = inlined_call_operand.hbm [shape: f32[16,64], index: 3, kind: output, shape index: {}]  }
   0x1   :  { %9 = vsyncpa [#allocation6], 0 }
   0x2   :  { %10 = vsyncpa [#allocation4], 0  ;;  %s852_s12 = smov [#allocation2]   ;;  %s780_s16 = scalar_lea.hbm %s937_s0, 256 }
   0x3   :  { %s16_s13 = sshll.u32 %s852_s12, 4  ;;  %p781_p0 = scmp.ne.s32.totalorder %s937_s0, %s780_s16  ;;  %s17_s13 = int_to_ptr.vmem [resolvable:$true] %s16_s13 }
   0x4   :  { %p784_p1 = scmp.lt.u32.totalorder %s780_s16, %s937_s0 }
   0x6   :  { %p786_p2 = pnand %p784_p1, %p781_p0 }
   0x8   :  { %789 = shalt.err (!%p786_p2)
}
   0x9   :  { %s790_s21 = scalar_lea.vmem %s17_s13, 256  ;;  %p795_p4 = scmp.lt.s32.totalorder %s17_s13, %s17_s13 }
   0xa   :  { %p791_p3 = scmp.ne.s32.totalorder %s17_s13, %s790_s21  ;;  %p796_p5 = scmp.lt.s32.totalorder %s790_s21, %s790_s21 }
   0xc   :  { %p797_p6 = por %p796_p5, %p795_p4 }
   0xe   :  { %p798_p7 = pnand %p797_p6, %p791_p3 }
  0x10   :  { %801 = shalt.err (!%p798_p7)
}
  0x11   :  { %s853_s22 = smov 128   ;;  %s854_s23 = smov 8  }
  0x12   :  { %22 = dma.hbm_to_vmem [thread:$0]  %s937_s0, 256, %s17_s13, [#allocation3], %s853_s22, %s853_s22, %s854_s23  }
  0x13   :  { %s855_s26 = smov [#allocation5]   ;;  %s802_s30 = scalar_lea.hbm %s938_s1, 512 }
  0x14   :  { %s28_s27 = sshll.u32 %s855_s26, 4  ;;  %p803_p8 = scmp.ne.s32.totalorder %s938_s1, %s802_s30  ;;  %s29_s27 = int_to_ptr.vmem [resolvable:$true] %s28_s27 }
  0x15   :  { %p806_p9 = scmp.lt.u32.totalorder %s802_s30, %s938_s1 }
  0x17   :  { %p808_p10 = pnand %p806_p9, %p803_p8 }
  0x19   :  { %811 = shalt.err (!%p808_p10)
}
  0x1a   :  { %s812_s8 = scalar_lea.vmem %s29_s27, 512  ;;  %p817_p12 = scmp.lt.s32.totalorder %s29_s27, %s29_s27 }
  0x1b   :  { %p813_p11 = scmp.ne.s32.totalorder %s29_s27, %s812_s8  ;;  %p818_p13 = scmp.lt.s32.totalorder %s812_s8, %s812_s8 }
  0x1d   :  { %p819_p0 = por %p818_p13, %p817_p12 }
  0x1f   :  { %p820_p1 = pnand %p819_p0, %p813_p11 }
  0x21   :  { %823 = shalt.err (!%p820_p1)
}
  0x22   :  { %34 = dma.hbm_to_vmem [thread:$0]  %s938_s1, 512, %s29_s27, [#allocation6], %s853_s22, %s853_s22, %s854_s23  }
  0x23   :  { %846 = dma.done.wait [#allocation3], 256  }
  0x24   :  { %847 = vsyncadd [#allocation3], 4294967040 }
  0x25   :  { %848 = dma.done.wait [#allocation6], 512  }
  0x26   :  { %849 = vsyncadd [#allocation6], 4294966784  ;;  %vm56_vm0 = vcmask 261120   ;;  %v43_v0 = vld [vmem:[#allocation5] sm:$0xff]  ;;  %v44_v1 = vld [vmem:[#allocation5 + $0x8] sm:$0xff]  ;;  %s856_s11 = smov [#allocation7]  }
  0x27   :  { %v45_v2 = vld [vmem:[#allocation5 + $0x10] sm:$0xff]  ;;  %v64_v3 = vand.u32 4294901760, %v43_v0  ;;  %v67_v4 = vand.u32 4294901760, %v44_v1  ;;  %v46_v5 = vld [vmem:[#allocation5 + $0x18] sm:$0xff]  ;;  %s599_s12 = sshll.u32 %s856_s11, 4  ;;  %vm591_vm1 = vcmask 523264   ;;  %s600_s12 = int_to_ptr.vmem [resolvable:$true] %s599_s12 }
  0x28   :  { %v70_v6 = vand.u32 4294901760, %v45_v2  ;;  %v47_v7 = vld [vmem:[#allocation2] sm:$0xff]  ;;  %v48_v8 = vld [vmem:[#allocation2 + $0x8] sm:$0xff]  ;;  %v73_v9 = vand.u32 4294901760, %v46_v5  ;;  %s824_s13 = scalar_lea.vmem %s600_s12, 256  ;;  %p829_p3 = scmp.lt.s32.totalorder %s600_s12, %s600_s12 }
  0x29   :  { %v58_v10 = vsel %vm56_vm0, %v47_v7, 0  ;;  %v61_v11 = vsel %vm56_vm0, %v48_v8, 0  ;;  %v715_v12 = vpack.c.bf16 %v67_v4, %v64_v3  ;;  %v154_v15 = vsub.f32 %v43_v0, %v64_v3  ;;  %v612_v46 = vld [vmem:[%s939_s2] ss:$0 sm:$0xff]  ;;  %p825_p2 = scmp.ne.s32.totalorder %s600_s12, %s824_s13  ;;  %p830_p4 = scmp.lt.s32.totalorder %s824_s13, %s824_s13 }
  0x2a   :  { %v907_v13 = vand.u32 4294901760, %v58_v10  ;;  %v909_v14 = vand.u32 4294901760, %v61_v11  ;;  %v719_v16 = vpack.c.bf16 %v73_v9, %v70_v6  ;;  %v161_v17 = vsub.f32 %v44_v1, %v67_v4 }
  0x2b   :  { %v168_v18 = vsub.f32 %v45_v2, %v70_v6  ;;  %v175_v19 = vsub.f32 %v46_v5, %v73_v9  ;;  %716 = vmatprep.subr.bf16.mxu1 %v715_v12  ;;  %740 = vmatprep.subr.bf16.mxu0 %v715_v12  ;;  %v155_v22 = vand.u32 4294901760, %v154_v15  ;;  %p831_p5 = por %p830_p4, %p829_p3 }
  0x2c   :  { %v133_v20 = vsub.f32 %v58_v10, %v907_v13  ;;  %v143_v21 = vsub.f32 %v61_v11, %v909_v14  ;;  %718 = vmatpush3.bf16.msra.mxu1 %v715_v12  ;;  %742 = vmatpush3.bf16.msra.mxu0 %v715_v12  ;;  %v162_v23 = vand.u32 4294901760, %v161_v17  ;;  %v731_v44 = vpack.c.bf16 %v161_v17, %v154_v15 }
  0x2d   :  { %v169_v24 = vand.u32 4294901760, %v168_v18  ;;  %v176_v25 = vand.u32 4294901760, %v175_v19  ;;  %720 = vmatprep.subr.bf16.mxu1 %v719_v16  ;;  %744 = vmatprep.subr.bf16.mxu0 %v719_v16  ;;  %v156_v28 = vsub.f32 %v154_v15, %v155_v22  ;;  %v735_v45 = vpack.c.bf16 %v175_v19, %v168_v18  ;;  %p832_p6 = pnand %p831_p5, %p825_p2 }
  0x2e   :  { %v134_v26 = vand.u32 4294901760, %v133_v20  ;;  %v144_v27 = vand.u32 4294901760, %v143_v21  ;;  %v163_v29 = vsub.f32 %v161_v17, %v162_v23  ;;  %v747_v30 = vpack.c.bf16 %v162_v23, %v155_v22 }
  0x2f   :  { %v170_v31 = vsub.f32 %v168_v18, %v169_v24  ;;  %v177_v32 = vsub.f32 %v175_v19, %v176_v25  ;;  %v157_v35 = vand.u32 4294901760, %v156_v28  ;;  %v751_v43 = vpack.c.bf16 %v176_v25, %v169_v24 }
  0x30   :  { %v135_v33 = vsub.f32 %v133_v20, %v134_v26  ;;  %690 = vmatprep.mubr.f32.mxu0 %v134_v26  ;;  %v145_v34 = vsub.f32 %v143_v21, %v144_v27  ;;  %722 = vmatpush3.bf16.msra.mxu1 %v719_v16  ;;  %v164_v36 = vand.u32 4294901760, %v163_v29 }
  0x31   :  { %746 = vmatpush3.bf16.msra.mxu0 %v719_v16  ;;  %v171_v37 = vand.u32 4294901760, %v170_v31  ;;  %v178_v38 = vand.u32 4294901760, %v177_v32 }
  0x32   :  { %v136_v39 = vand.u32 4294901760, %v135_v33  ;;  %v146_v40 = vand.u32 4294901760, %v145_v34  ;;  %748 = vmatprep.subr.bf16.mxu0 %v747_v30  ;;  %v723_v41 = vpack.c.bf16 %v164_v36, %v157_v35 }
  0x33   :  { %v727_v42 = vpack.c.bf16 %v178_v38, %v171_v37 }
  0x34   :  { %657 = vmatprep.mubr.f32.mxu1 %v136_v39  ;;  %691 = vmatmul.mubr.f32.vlgmr.msra.gmra.mrb[0].mxu0 %v144_v27 }
  0x35   :  { %658 = vmatmul.mubr.f32.vlgmr.msra.gmra.mrb[0].mxu1 %v146_v40  ;;  %724 = vmatprep.subr.bf16.mxu1 %v723_v41 }
  0x36   :  { %726 = vmatpush3.bf16.msra.mxu1 %v723_v41  ;;  %750 = vmatpush3.bf16.msra.mxu0 %v747_v30 }
  0x37   :  { %728 = vmatprep.subr.bf16.mxu1 %v727_v42  ;;  %752 = vmatprep.subr.bf16.mxu0 %v751_v43 }
  0x38   :  { %668 = vmatprep.mubr.f32.mxu1 %v907_v13  ;;  %701 = vmatprep.mubr.f32.mxu0 %v907_v13 }
  0x3a   :  { %730 = vmatpush3.bf16.msra.mxu1 %v727_v42  ;;  %754 = vmatpush3.bf16.msra.mxu0 %v751_v43 }
  0x3b   :  { %732 = vmatprep.subr.bf16.mxu1 %v731_v44  ;;  %756 = vmatprep.subr.bf16.mxu0 %v715_v12 }
  0x3d   :  { %669 = vmatmul.mubr.f32.vlgmr.msra.gmra.mrb[0].mxu1 %v909_v14  ;;  %702 = vmatmul.mubr.f32.vlgmr.msra.gmra.mrb[0].mxu0 %v909_v14 }
  0x3e   :  { %734 = vmatpush3.bf16.msra.mxu1 %v731_v44  ;;  %758 = vmatpush3.bf16.msra.mxu0 %v715_v12 }
  0x3f   :  { %736 = vmatprep.subr.bf16.mxu1 %v735_v45  ;;  %760 = vmatprep.subr.bf16.mxu0 %v719_v16 }
  0x40   :  { %679 = vmatprep.mubr.f32.mxu1 %v133_v20  ;;  %712 = vmatprep.mubr.f32.mxu0 %v907_v13 }
  0x42   :  { %738 = vmatpush3.bf16.msra.mxu1 %v735_v45  ;;  %762 = vmatpush3.bf16.msra.mxu0 %v719_v16 }
  0x45   :  { %680 = vmatmul.mubr.f32.vlgmr.msra.gmra.mrb[0].mxu1 %v143_v21  ;;  %713 = vmatmul.mubr.f32.vlgmr.msra.gmra.mrb[0].mxu0 %v909_v14 }
 0x118   :  { %v681_v47 = vpop.f32.mrb[0].mxu1  ;;  %v714_v48 = vpop.f32.mrb[0].mxu0 }
 0x119   :  { %v763_v49 = vadd.f32 %v681_v47, %v612_v46  ;;  %v325_v50 = vpop.f32.mrb[1].mxu1  ;;  %v581_v51 = vpop.f32.mrb[1].mxu0 }
 0x11a   :  { %v765_v52 = vadd.f32 %v612_v46, %v325_v50 }
 0x11b   :  { %v764_v53 = vadd.f32 %v763_v49, %v714_v48 }
 0x11c   :  { %v766_v54 = vadd.f32 %v765_v52, %v581_v51 }
 0x11d   :  { %593 = vst.msk [vmem:[#allocation7 + $0x8] sm:$0xff] %vm591_vm1, %v764_v53 }
 0x11e   :  { %592 = vst.msk [vmem:[#allocation7] sm:$0xff] %vm591_vm1, %v766_v54 }
 0x11f   :  { %835 = shalt.err (!%p832_p6)
}
 0x120   :  { %s836_s15 = scalar_lea.hbm %s940_s3, 256 }
 0x121   :  { %p837_p7 = scmp.ne.s32.totalorder %s940_s3, %s836_s15  ;;  %p840_p8 = scmp.lt.u32.totalorder %s836_s15, %s940_s3 }
 0x123   :  { %p842_p9 = pnand %p840_p8, %p837_p7 }
 0x125   :  { %845 = shalt.err (!%p842_p9)
}
 0x126   :  { %605 = dma.vmem_to_hbm [thread:$0]  %s600_s12, 256, %s940_s3, [#allocation4], %s853_s22, %s853_s22, %s854_s23  }
 0x127   :  { %850 = dma.done.wait [#allocation4], 256  }
 0x128   :  { %851 = vsyncadd [#allocation4], 4294967040 }
 0x129   :  { %609 = vsyncpa [#allocation3], 1 }
 0x12a   :  { %610 = vsyncpa [#allocation6], 1 }
 0x12b   :  { %611 = vsyncpa [#allocation4], 1 }

// kernel: tpu_custom_call.1
= control target key start
LH: loop header
LB: loop body
LE: loop exit
PB: predicated region body
PF: predicated region fallthrough
CT: control target
= control target key end

     0   :  { %8 = vsyncpa [#allocation3], 0  ;;  %s937_s0 = inlined_call_operand.hbm [shape: f32[16,32], index: 0, kind: input, shape index: {}]   ;;  %s938_s1 = inlined_call_operand.hbm [shape: f32[32,64], index: 1, kind: input, shape index: {}]   ;;  %s939_s2 = inlined_call_operand.vmem [shape: f32[1,64], index: 2, kind: input, shape index: {}]   ;;  %s940_s3 = inlined_call_operand.hbm [shape: f32[16,64], index: 3, kind: output, shape index: {}]  }
   0x1   :  { %9 = vsyncpa [#allocation6], 0 }
   0x2   :  { %10 = vsyncpa [#allocation4], 0  ;;  %s852_s12 = smov [#allocation2]   ;;  %s780_s16 = scalar_lea.hbm %s937_s0, 256 }
   0x3   :  { %s16_s13 = sshll.u32 %s852_s12, 4  ;;  %p781_p0 = scmp.ne.s32.totalorder %s937_s0, %s780_s16  ;;  %s17_s13 = int_to_ptr.vmem [resolvable:$true] %s16_s13 }
   0x4   :  { %p784_p1 = scmp.lt.u32.totalorder %s780_s16, %s937_s0 }
   0x6   :  { %p786_p2 = pnand %p784_p1, %p781_p0 }
   0x8   :  { %789 = shalt.err (!%p786_p2)
}
   0x9   :  { %s790_s21 = scalar_lea.vmem %s17_s13, 256  ;;  %p795_p4 = scmp.lt.s32.totalorder %s17_s13, %s17_s13 }
   0xa   :  { %p791_p3 = scmp.ne.s32.totalorder %s17_s13, %s790_s21  ;;  %p796_p5 = scmp.lt.s32.totalorder %s790_s21, %s790_s21 }
   0xc   :  { %p797_p6 = por %p796_p5, %p795_p4 }
   0xe   :  { %p798_p7 = pnand %p797_p6, %p791_p3 }
  0x10   :  { %801 = shalt.err (!%p798_p7)
}
  0x11   :  { %s853_s22 = smov 128   ;;  %s854_s23 = smov 8  }
  0x12   :  { %22 = dma.hbm_to_vmem [thread:$0]  %s937_s0, 256, %s17_s13, [#allocation3], %s853_s22, %s853_s22, %s854_s23  }
  0x13   :  { %s855_s26 = smov [#allocation5]   ;;  %s802_s30 = scalar_lea.hbm %s938_s1, 512 }
  0x14   :  { %s28_s27 = sshll.u32 %s855_s26, 4  ;;  %p803_p8 = scmp.ne.s32.totalorder %s938_s1, %s802_s30  ;;  %s29_s27 = int_to_ptr.vmem [resolvable:$true] %s28_s27 }
  0x15   :  { %p806_p9 = scmp.lt.u32.totalorder %s802_s30, %s938_s1 }
  0x17   :  { %p808_p10 = pnand %p806_p9, %p803_p8 }
  0x19   :  { %811 = shalt.err (!%p808_p10)
}
  0x1a   :  { %s812_s8 = scalar_lea.vmem %s29_s27, 512  ;;  %p817_p12 = scmp.lt.s32.totalorder %s29_s27, %s29_s27 }
  0x1b   :  { %p813_p11 = scmp.ne.s32.totalorder %s29_s27, %s812_s8  ;;  %p818_p13 = scmp.lt.s32.totalorder %s812_s8, %s812_s8 }
  0x1d   :  { %p819_p0 = por %p818_p13, %p817_p12 }
  0x1f   :  { %p820_p1 = pnand %p819_p0, %p813_p11 }
  0x21   :  { %823 = shalt.err (!%p820_p1)
}
  0x22   :  { %34 = dma.hbm_to_vmem [thread:$0]  %s938_s1, 512, %s29_s27, [#allocation6], %s853_s22, %s853_s22, %s854_s23  }
  0x23   :  { %846 = dma.done.wait [#allocation3], 256  }
  0x24   :  { %847 = vsyncadd [#allocation3], 4294967040 }
  0x25   :  { %848 = dma.done.wait [#allocation6], 512  }
  0x26   :  { %849 = vsyncadd [#allocation6], 4294966784  ;;  %vm56_vm0 = vcmask 261120   ;;  %v43_v0 = vld [vmem:[#allocation5] sm:$0xff]  ;;  %v44_v1 = vld [vmem:[#allocation5 + $0x8] sm:$0xff]  ;;  %s856_s11 = smov [#allocation7]  }
  0x27   :  { %v45_v2 = vld [vmem:[#allocation5 + $0x10] sm:$0xff]  ;;  %v64_v3 = vand.u32 4294901760, %v43_v0  ;;  %v67_v4 = vand.u32 4294901760, %v44_v1  ;;  %v46_v5 = vld [vmem:[#allocation5 + $0x18] sm:$0xff]  ;;  %s599_s12 = sshll.u32 %s856_s11, 4  ;;  %vm591_vm1 = vcmask 523264   ;;  %s600_s12 = int_to_ptr.vmem [resolvable:$true] %s599_s12 }
  0x28   :  { %v70_v6 = vand.u32 4294901760, %v45_v2  ;;  %v47_v7 = vld [vmem:[#allocation2] sm:$0xff]  ;;  %v48_v8 = vld [vmem:[#allocation2 + $0x8] sm:$0xff]  ;;  %v73_v9 = vand.u32 4294901760, %v46_v5  ;;  %s824_s13 = scalar_lea.vmem %s600_s12, 256  ;;  %p829_p3 = scmp.lt.s32.totalorder %s600_s12, %s600_s12 }
  0x29   :  { %v58_v10 = vsel %vm56_vm0, %v47_v7, 0  ;;  %v61_v11 = vsel %vm56_vm0, %v48_v8, 0  ;;  %v715_v12 = vpack.c.bf16 %v67_v4, %v64_v3  ;;  %v154_v15 = vsub.f32 %v43_v0, %v64_v3  ;;  %v612_v46 = vld [vmem:[%s939_s2] ss:$0 sm:$0xff]  ;;  %p825_p2 = scmp.ne.s32.totalorder %s600_s12, %s824_s13  ;;  %p830_p4 = scmp.lt.s32.totalorder %s824_s13, %s824_s13 }
  0x2a   :  { %v907_v13 = vand.u32 4294901760, %v58_v10  ;;  %v909_v14 = vand.u32 4294901760, %v61_v11  ;;  %v719_v16 = vpack.c.bf16 %v73_v9, %v70_v6  ;;  %v161_v17 = vsub.f32 %v44_v1, %v67_v4 }
  0x2b   :  { %v168_v18 = vsub.f32 %v45_v2, %v70_v6  ;;  %v175_v19 = vsub.f32 %v46_v5, %v73_v9  ;;  %716 = vmatprep.subr.bf16.mxu1 %v715_v12  ;;  %740 = vmatprep.subr.bf16.mxu0 %v715_v12  ;;  %v155_v22 = vand.u32 4294901760, %v154_v15  ;;  %p831_p5 = por %p830_p4, %p829_p3 }
  0x2c   :  { %v133_v20 = vsub.f32 %v58_v10, %v907_v13  ;;  %v143_v21 = vsub.f32 %v61_v11, %v909_v14  ;;  %718 = vmatpush3.bf16.msra.mxu1 %v715_v12  ;;  %742 = vmatpush3.bf16.msra.mxu0 %v715_v12  ;;  %v162_v23 = vand.u32 4294901760, %v161_v17  ;;  %v731_v44 = vpack.c.bf16 %v161_v17, %v154_v15 }
  0x2d   :  { %v169_v24 = vand.u32 4294901760, %v168_v18  ;;  %v176_v25 = vand.u32 4294901760, %v175_v19  ;;  %720 = vmatprep.subr.bf16.mxu1 %v719_v16  ;;  %744 = vmatprep.subr.bf16.mxu0 %v719_v16  ;;  %v156_v28 = vsub.f32 %v154_v15, %v155_v22  ;;  %v735_v45 = vpack.c.bf16 %v175_v19, %v168_v18  ;;  %p832_p6 = pnand %p831_p5, %p825_p2 }
  0x2e   :  { %v134_v26 = vand.u32 4294901760, %v133_v20  ;;  %v144_v27 = vand.u32 4294901760, %v143_v21  ;;  %v163_v29 = vsub.f32 %v161_v17, %v162_v23  ;;  %v747_v30 = vpack.c.bf16 %v162_v23, %v155_v22 }
  0x2f   :  { %v170_v31 = vsub.f32 %v168_v18, %v169_v24  ;;  %v177_v32 = vsub.f32 %v175_v19, %v176_v25  ;;  %v157_v35 = vand.u32 4294901760, %v156_v28  ;;  %v751_v43 = vpack.c.bf16 %v176_v25, %v169_v24 }
  0x30   :  { %v135_v33 = vsub.f32 %v133_v20, %v134_v26  ;;  %690 = vmatprep.mubr.f32.mxu0 %v134_v26  ;;  %v145_v34 = vsub.f32 %v143_v21, %v144_v27  ;;  %722 = vmatpush3.bf16.msra.mxu1 %v719_v16  ;;  %v164_v36 = vand.u32 4294901760, %v163_v29 }
  0x31   :  { %746 = vmatpush3.bf16.msra.mxu0 %v719_v16  ;;  %v171_v37 = vand.u32 4294901760, %v170_v31  ;;  %v178_v38 = vand.u32 4294901760, %v177_v32 }
  0x32   :  { %v136_v39 = vand.u32 4294901760, %v135_v33  ;;  %v146_v40 = vand.u32 4294901760, %v145_v34  ;;  %748 = vmatprep.subr.bf16.mxu0 %v747_v30  ;;  %v723_v41 = vpack.c.bf16 %v164_v36, %v157_v35 }
  0x33   :  { %v727_v42 = vpack.c.bf16 %v178_v38, %v171_v37 }
  0x34   :  { %657 = vmatprep.mubr.f32.mxu1 %v136_v39  ;;  %691 = vmatmul.mubr.f32.vlgmr.msra.gmra.mrb[0].mxu0 %v144_v27 }
  0x35   :  { %658 = vmatmul.mubr.f32.vlgmr.msra.gmra.mrb[0].mxu1 %v146_v40  ;;  %724 = vmatprep.subr.bf16.mxu1 %v723_v41 }
  0x36   :  { %726 = vmatpush3.bf16.msra.mxu1 %v723_v41  ;;  %750 = vmatpush3.bf16.msra.mxu0 %v747_v30 }
  0x37   :  { %728 = vmatprep.subr.bf16.mxu1 %v727_v42  ;;  %752 = vmatprep.subr.bf16.mxu0 %v751_v43 }
  0x38   :  { %668 = vmatprep.mubr.f32.mxu1 %v907_v13  ;;  %701 = vmatprep.mubr.f32.mxu0 %v907_v13 }
  0x3a   :  { %730 = vmatpush3.bf16.msra.mxu1 %v727_v42  ;;  %754 = vmatpush3.bf16.msra.mxu0 %v751_v43 }
  0x3b   :  { %732 = vmatprep.subr.bf16.mxu1 %v731_v44  ;;  %756 = vmatprep.subr.bf16.mxu0 %v715_v12 }
  0x3d   :  { %669 = vmatmul.mubr.f32.vlgmr.msra.gmra.mrb[0].mxu1 %v909_v14  ;;  %702 = vmatmul.mubr.f32.vlgmr.msra.gmra.mrb[0].mxu0 %v909_v14 }
  0x3e   :  { %734 = vmatpush3.bf16.msra.mxu1 %v731_v44  ;;  %758 = vmatpush3.bf16.msra.mxu0 %v715_v12 }
  0x3f   :  { %736 = vmatprep.subr.bf16.mxu1 %v735_v45  ;;  %760 = vmatprep.subr.bf16.mxu0 %v719_v16 }
  0x40   :  { %679 = vmatprep.mubr.f32.mxu1 %v133_v20  ;;  %712 = vmatprep.mubr.f32.mxu0 %v907_v13 }
  0x42   :  { %738 = vmatpush3.bf16.msra.mxu1 %v735_v45  ;;  %762 = vmatpush3.bf16.msra.mxu0 %v719_v16 }
  0x45   :  { %680 = vmatmul.mubr.f32.vlgmr.msra.gmra.mrb[0].mxu1 %v143_v21  ;;  %713 = vmatmul.mubr.f32.vlgmr.msra.gmra.mrb[0].mxu0 %v909_v14 }
 0x118   :  { %v681_v47 = vpop.f32.mrb[0].mxu1  ;;  %v714_v48 = vpop.f32.mrb[0].mxu0 }
 0x119   :  { %v763_v49 = vadd.f32 %v681_v47, %v612_v46  ;;  %v325_v50 = vpop.f32.mrb[1].mxu1  ;;  %v581_v51 = vpop.f32.mrb[1].mxu0 }
 0x11a   :  { %v765_v52 = vadd.f32 %v612_v46, %v325_v50 }
 0x11b   :  { %v764_v53 = vadd.f32 %v763_v49, %v714_v48 }
 0x11c   :  { %v766_v54 = vadd.f32 %v765_v52, %v581_v51 }
 0x11d   :  { %593 = vst.msk [vmem:[#allocation7 + $0x8] sm:$0xff] %vm591_vm1, %v764_v53 }
 0x11e   :  { %592 = vst.msk [vmem:[#allocation7] sm:$0xff] %vm591_vm1, %v766_v54 }
 0x11f   :  { %835 = shalt.err (!%p832_p6)
}
 0x120   :  { %s836_s15 = scalar_lea.hbm %s940_s3, 256 }
 0x121   :  { %p837_p7 = scmp.ne.s32.totalorder %s940_s3, %s836_s15  ;;  %p840_p8 = scmp.lt.u32.totalorder %s836_s15, %s940_s3 }
 0x123   :  { %p842_p9 = pnand %p840_p8, %p837_p7 }
 0x125   :  { %845 = shalt.err (!%p842_p9)
}
 0x126   :  { %605 = dma.vmem_to_hbm [thread:$0]  %s600_s12, 256, %s940_s3, [#allocation4], %s853_s22, %s853_s22, %s854_s23  }
 0x127   :  { %850 = dma.done.wait [#allocation4], 256  }
 0x128   :  { %851 = vsyncadd [#allocation4], 4294967040 }
 0x129   :  { %609 = vsyncpa [#allocation3], 1 }
 0x12a   :  { %610 = vsyncpa [#allocation6], 1 }
 0x12b   :  { %611 = vsyncpa [#allocation4], 1 }

</bundles_post_ra>
